<compile_context>
chip_gen: v7x
topology: tpu7x:2x2x1
jax: 0.10.0
libtpu: 0.0.40
codegen_flags: <defaults>
</compile_context>

<pallas_src>
import functools

import jax
import jax.numpy as jnp
from jax.experimental import pallas as pl
from jax.experimental.pallas import tpu as pltpu

_LANE = 128
_SUBLANE = 8
_SPLIT_MIN_ROWS = 2048   # below this the kernel is overhead-bound: 1 grid step
_SPLIT_TILE = 256


def _round_up(x, m):
    return ((x + m - 1) // m) * m


# ----------------------------------------------------------------------------
# Fused Pallas kernel: (block-diag encoder matmul + bias + per-column PReLU)
# -> decoder matmul + bias, all on one row-tile of per-pixel features.
# ----------------------------------------------------------------------------
def _fused_kernel(x_ref, we_ref, be_ref, alpha_ref, wd_ref, bd_ref, o_ref):
    # x_ref:     (TM, 2K)  bf16  concatenated [hori | vert] per-pixel features
    # we_ref:    (2K, FP)  bf16  block-diag [enc_h_w (+) enc_v_w], FP = 128 lanes
    # be_ref:    (1, FP)   f32   concat(enc_h_b, enc_v_b), zero-padded
    # alpha_ref: (1, FP)   f32   per-column PReLU slope (alpha_h | alpha_v | 0)
    # wd_ref:    (FP, NP)  bf16  decoder weight, N padded to 128 lanes
    # bd_ref:    (1, NP)   f32
    enc = jnp.dot(x_ref[...], we_ref[...], preferred_element_type=jnp.float32)
    enc = enc + be_ref[...]
    enc = jnp.where(enc >= 0.0, enc, alpha_ref[...] * enc)   # PReLU in f32 (VPU)
    out = jnp.dot(enc.astype(wd_ref.dtype), wd_ref[...],
                  preferred_element_type=jnp.float32)
    out = out + bd_ref[...]
    o_ref[...] = out.astype(o_ref.dtype)                     # bf16 writeback


def fused_pointwise(x2, we, be, alpha, wd, bd):
    """out = (PReLU(x2 @ we + be)) @ wd + bd, one fused pallas_call."""
    m, k2 = x2.shape
    fp = we.shape[1]
    npad = wd.shape[1]
    assert we.shape[0] == k2 and wd.shape[0] == fp
    assert fp % _LANE == 0 and npad % _LANE == 0

    # Generation-aware grid: single step unless there is enough work to shard
    # across v7x's two TensorCores (v5e/v6e are single-TC, splitting is pure
    # per-step overhead there).
    if m >= _SPLIT_MIN_ROWS and m % _SPLIT_TILE == 0:
        tile_m, mp = _SPLIT_TILE, m
        semantics = ("parallel",)
    else:
        tile_m = mp = _round_up(m, _SUBLANE)
        semantics = ("arbitrary",)

    if mp != m:  # at most 7 rows of sublane-alignment padding, never a full copy
        x2 = jnp.pad(x2, ((0, mp - m), (0, 0)))

    flops = 2 * mp * k2 * fp + 2 * mp * fp * npad
    bytes_accessed = (mp * k2 * 2                       # activations (bf16)
                      + k2 * fp * 2 + 2 * fp * 4        # enc weight + bias + alpha
                      + fp * npad * 2 + npad * 4        # dec weight + bias
                      + mp * npad * 2)                  # bf16 output slab

    out = pl.pallas_call(
        _fused_kernel,
        out_shape=jax.ShapeDtypeStruct((mp, npad), jnp.bfloat16),
        grid=(mp // tile_m,),
        in_specs=[
            pl.BlockSpec((tile_m, k2), lambda i: (i, 0)),   # activation tile
            pl.BlockSpec((k2, fp), lambda i: (0, 0)),       # encoder weight (resident)
            pl.BlockSpec((1, fp), lambda i: (0, 0)),        # encoder bias
            pl.BlockSpec((1, fp), lambda i: (0, 0)),        # per-column PReLU slopes
            pl.BlockSpec((fp, npad), lambda i: (0, 0)),     # decoder weight (resident)
            pl.BlockSpec((1, npad), lambda i: (0, 0)),      # decoder bias
        ],
        out_specs=pl.BlockSpec((tile_m, npad), lambda i: (i, 0)),
        compiler_params=pltpu.CompilerParams(dimension_semantics=semantics),
        cost_estimate=pl.CostEstimate(
            flops=flops, transcendentals=0, bytes_accessed=bytes_accessed),
    )(x2, we, be, alpha, wd, bd)
    return out[:m]


# ----------------------------------------------------------------------------
# Parameter init (synthetic) + packing into the fused/bf16 kernel layout
# ----------------------------------------------------------------------------
def init_params(key, *, channels, group_frames, num_filters, num_keypoints):
    k1, k2, k3 = jax.random.split(key, 3)
    k_in = channels * group_frames
    d_in = 2 * num_filters
    scale_e = 1.0 / jnp.sqrt(jnp.float32(k_in))
    scale_d = 1.0 / jnp.sqrt(jnp.float32(d_in))
    return {
        "enc_h_w": jax.random.normal(k1, (k_in, num_filters), jnp.float32) * scale_e,
        "enc_h_b": jnp.zeros((num_filters,), jnp.float32),
        "enc_v_w": jax.random.normal(k2, (k_in, num_filters), jnp.float32) * scale_e,
        "enc_v_b": jnp.zeros((num_filters,), jnp.float32),
        "dec_w": jax.random.normal(k3, (d_in, num_keypoints), jnp.float32) * scale_d,
        "dec_b": jnp.zeros((num_keypoints,), jnp.float32),
        "prelu_alpha_h": 0.25,  # encoderHoriMap's nn.PReLU() default init
        "prelu_alpha_v": 0.25,  # encoderVertMap's nn.PReLU() default init
    }


def pack_params(params, *, channels, group_frames, num_filters, num_keypoints):
    """Build fused-kernel weights once: block-diag encoder, lane-padded dims."""
    k_in = channels * group_frames
    f = num_filters
    fp = _round_up(2 * f, _LANE)                 # lane-dense intermediate
    npad = _round_up(num_keypoints, _LANE)       # lane-dense output slab

    we = jnp.zeros((2 * k_in, fp), jnp.bfloat16)
    we = we.at[:k_in, :f].set(params["enc_h_w"].astype(jnp.bfloat16))
    we = we.at[k_in:, f:2 * f].set(params["enc_v_w"].astype(jnp.bfloat16))

    be = jnp.zeros((1, fp), jnp.float32)
    be = be.at[:, :f].set(params["enc_h_b"])
    be = be.at[:, f:2 * f].set(params["enc_v_b"])

    alpha = jnp.zeros((1, fp), jnp.float32)
    alpha = alpha.at[:, :f].set(jnp.float32(params["prelu_alpha_h"]))
    alpha = alpha.at[:, f:2 * f].set(jnp.float32(params["prelu_alpha_v"]))

    wd = jnp.zeros((fp, npad), jnp.bfloat16)
    wd = wd.at[:2 * f, :num_keypoints].set(params["dec_w"].astype(jnp.bfloat16))
    bd = jnp.zeros((1, npad), jnp.float32)
    bd = bd.at[:, :num_keypoints].set(params["dec_b"])

    return {"we": we, "be": be, "alpha": alpha, "wd": wd, "bd": bd}


# ----------------------------------------------------------------------------
# BaseModel forward (chirpModel='maxpool', frontModel='temporal', gcnType='None')
# ----------------------------------------------------------------------------
def base_model_forward(hori_map, vert_map, packed, *, num_keypoints):
    # horiMap/vertMap: (B, numGroupFrames, C, rangeSize, azimuthSize)
    b, t, c, r, a = hori_map.shape

    # chirpModel == 'maxpool': permute(0,2,1,3,4) -> (B, C, T, R, A); the
    # pointwise encoder consumes per-pixel (C, T) features.  Both permutes and
    # the per-pixel flatten collapse into one transpose of the channel-concat
    # input (done in bf16 to halve the HBM shuffle bytes):
    #   concat on C: (B, T, 2C, R, A) --(0,3,4,2,1)--> (B, R, A, 2C, T)
    # so columns [0, C*T) are the hori features and [C*T, 2*C*T) the vert ones.
    x = jnp.concatenate([hori_map.astype(jnp.bfloat16),
                         vert_map.astype(jnp.bfloat16)], axis=2)
    x = jnp.transpose(x, (0, 3, 4, 2, 1))
    x2 = x.reshape(b * r * a, 2 * c * t)

    # one fused pallas_call: block-diag encode + PReLU + (implicit concat) + decode
    out2 = fused_pointwise(x2, packed["we"], packed["be"], packed["alpha"],
                           packed["wd"], packed["bd"])

    # slice the lane-padded bf16 slab back to numKeypoints, return PyTorch NCHW f32
    out = out2[:, :num_keypoints].reshape(b, r, a, num_keypoints)
    return jnp.transpose(out, (0, 3, 1, 2)).astype(jnp.float32)  # (B, K, H, W)


if __name__ == "__main__":
    # cfg (small, self-consistent):
    BATCH = 2
    NUM_GROUP_FRAMES = 8      # cfg.DATASET.numGroupFrames (temporal T)
    NUM_FRAMES = 4            # cfg.DATASET.numFrames (chirps; unused with 'maxpool')
    CHANNELS = 4              # per-frame radar channels
    RANGE = AZIMUTH = 16      # cfg.DATASET.rangeSize / azimuthSize
    HEATMAP = 16              # cfg.DATASET.heatmapSize (== RANGE/AZIMUTH here)
    NUM_FILTERS = 32          # cfg.MODEL.numFilters
    NUM_KEYPOINTS = 8         # cfg.DATASET.numKeypoints

    key = jax.random.PRNGKey(0)
    kh, kv, kp = jax.random.split(key, 3)
    hori = jax.random.normal(
        kh, (BATCH, NUM_GROUP_FRAMES, CHANNELS, RANGE, AZIMUTH), jnp.float32)
    vert = jax.random.normal(
        kv, (BATCH, NUM_GROUP_FRAMES, CHANNELS, RANGE, AZIMUTH), jnp.float32)

    params = init_params(
        kp, channels=CHANNELS, group_frames=NUM_GROUP_FRAMES,
        num_filters=NUM_FILTERS, num_keypoints=NUM_KEYPOINTS)
    packed = pack_params(
        params, channels=CHANNELS, group_frames=NUM_GROUP_FRAMES,
        num_filters=NUM_FILTERS, num_keypoints=NUM_KEYPOINTS)

    fwd = jax.jit(functools.partial(base_model_forward, num_keypoints=NUM_KEYPOINTS))
    out = fwd(hori, vert, packed)
    out = jax.block_until_ready(out)

    assert out.shape == (BATCH, NUM_KEYPOINTS, HEATMAP, HEATMAP), out.shape
    assert jnp.all(jnp.isfinite(out))
    print("KERNEL_OK")
</pallas_src>

<mosaic_0001>
module attributes {stable_mosaic.version = 11 : i64} {
  func.func @_fused_kernel(%arg0: i32, %arg1: memref<512x64xbf16, #tpu.memory_space<vmem>>, %arg2: memref<64x128xbf16, #tpu.memory_space<vmem>>, %arg3: memref<1x128xf32, #tpu.memory_space<vmem>>, %arg4: memref<1x128xf32, #tpu.memory_space<vmem>>, %arg5: memref<128x128xbf16, #tpu.memory_space<vmem>>, %arg6: memref<1x128xf32, #tpu.memory_space<vmem>>, %arg7: memref<512x128xbf16, #tpu.memory_space<vmem>>) attributes {dimension_semantics = [#tpu.dimension_semantics<arbitrary>], iteration_bounds = array<i64: 1>, scalar_prefetch = 0 : i64, scratch_operands = 0 : i64, tpu.core_type = #tpu.core_type<tc>, window_params = [{transform_indices = @transform_0, window_bounds = array<i64: 512, 64>}, {pipeline_mode = #tpu.pipeline_mode<synchronous>, transform_indices = @transform_1, window_bounds = array<i64: 64, 128>}, {pipeline_mode = #tpu.pipeline_mode<synchronous>, transform_indices = @transform_2, window_bounds = array<i64: 1, 128>}, {pipeline_mode = #tpu.pipeline_mode<synchronous>, transform_indices = @transform_3, window_bounds = array<i64: 1, 128>}, {pipeline_mode = #tpu.pipeline_mode<synchronous>, transform_indices = @transform_4, window_bounds = array<i64: 128, 128>}, {pipeline_mode = #tpu.pipeline_mode<synchronous>, transform_indices = @transform_5, window_bounds = array<i64: 1, 128>}, {transform_indices = @transform_6, window_bounds = array<i64: 512, 128>}]} {
    %c0 = arith.constant 0 : index
    %c0_0 = arith.constant 0 : index
    %0 = vector.load %arg1[%c0, %c0_0] : memref<512x64xbf16, #tpu.memory_space<vmem>>, vector<512x64xbf16>
    %c0_1 = arith.constant 0 : index
    %c0_2 = arith.constant 0 : index
    %1 = vector.load %arg2[%c0_1, %c0_2] : memref<64x128xbf16, #tpu.memory_space<vmem>>, vector<64x128xbf16>
    %cst = arith.constant dense<0.000000e+00> : vector<512x128xf32>
    %2 = tpu.matmul %0, %1, %cst {dimension_numbers = #tpu.dot_dimension_numbers<[1], [0], [0], [1], [0, 0, 1, 1], [], []>} : vector<512x64xbf16>, vector<64x128xbf16>, vector<512x128xf32> -> vector<512x128xf32>
    %c0_3 = arith.constant 0 : index
    %c0_4 = arith.constant 0 : index
    %3 = vector.load %arg3[%c0_3, %c0_4] : memref<1x128xf32, #tpu.memory_space<vmem>>, vector<1x128xf32>
    %4 = vector.broadcast %3 : vector<1x128xf32> to vector<512x128xf32>
    %5 = arith.addf %2, %4 : vector<512x128xf32>
    %cst_5 = arith.constant 0.000000e+00 : f32
    %6 = vector.broadcast %cst_5 : f32 to vector<512x128xf32>
    %7 = arith.cmpf oge, %5, %6 : vector<512x128xf32>
    %c0_6 = arith.constant 0 : index
    %c0_7 = arith.constant 0 : index
    %8 = vector.load %arg4[%c0_6, %c0_7] : memref<1x128xf32, #tpu.memory_space<vmem>>, vector<1x128xf32>
    %9 = vector.broadcast %8 : vector<1x128xf32> to vector<512x128xf32>
    %10 = arith.mulf %9, %5 : vector<512x128xf32>
    %11 = arith.select %7, %5, %10 : vector<512x128xi1>, vector<512x128xf32>
    %12 = arith.truncf %11 : vector<512x128xf32> to vector<512x128xbf16>
    %c0_8 = arith.constant 0 : index
    %c0_9 = arith.constant 0 : index
    %13 = vector.load %arg5[%c0_8, %c0_9] : memref<128x128xbf16, #tpu.memory_space<vmem>>, vector<128x128xbf16>
    %cst_10 = arith.constant dense<0.000000e+00> : vector<512x128xf32>
    %14 = tpu.matmul %12, %13, %cst_10 {dimension_numbers = #tpu.dot_dimension_numbers<[1], [0], [0], [1], [0, 0, 1, 1], [], []>} : vector<512x128xbf16>, vector<128x128xbf16>, vector<512x128xf32> -> vector<512x128xf32>
    %c0_11 = arith.constant 0 : index
    %c0_12 = arith.constant 0 : index
    %15 = vector.load %arg6[%c0_11, %c0_12] : memref<1x128xf32, #tpu.memory_space<vmem>>, vector<1x128xf32>
    %16 = vector.broadcast %15 : vector<1x128xf32> to vector<512x128xf32>
    %17 = arith.addf %14, %16 : vector<512x128xf32>
    %18 = arith.truncf %17 : vector<512x128xf32> to vector<512x128xbf16>
    %c0_13 = arith.constant 0 : index
    %c0_14 = arith.constant 0 : index
    %19 = vector.load %arg7[%c0_13, %c0_14] : memref<512x128xbf16, #tpu.memory_space<vmem>>, vector<512x128xbf16>
    tpu.vector_store %arg7[%c0_13, %c0_14], %18 {strides = array<i32>} : memref<512x128xbf16, #tpu.memory_space<vmem>>, vector<512x128xbf16>,
    return
  }
  func.func @transform_0(%arg0: i32) -> (i32, i32) {
    %c0_i32 = arith.constant 0 : i32
    %c0_i32_0 = arith.constant 0 : i32
    return %arg0, %c0_i32 : i32, i32
  }
  func.func @transform_1(%arg0: i32) -> (i32, i32) {
    %c0_i32 = arith.constant 0 : i32
    %c0_i32_0 = arith.constant 0 : i32
    %c0_i32_1 = arith.constant 0 : i32
    return %c0_i32, %c0_i32_0 : i32, i32
  }
  func.func @transform_2(%arg0: i32) -> (i32, i32) {
    %c0_i32 = arith.constant 0 : i32
    %c0_i32_0 = arith.constant 0 : i32
    %c0_i32_1 = arith.constant 0 : i32
    return %c0_i32, %c0_i32_0 : i32, i32
  }
  func.func @transform_3(%arg0: i32) -> (i32, i32) {
    %c0_i32 = arith.constant 0 : i32
    %c0_i32_0 = arith.constant 0 : i32
    %c0_i32_1 = arith.constant 0 : i32
    return %c0_i32, %c0_i32_0 : i32, i32
  }
  func.func @transform_4(%arg0: i32) -> (i32, i32) {
    %c0_i32 = arith.constant 0 : i32
    %c0_i32_0 = arith.constant 0 : i32
    %c0_i32_1 = arith.constant 0 : i32
    return %c0_i32, %c0_i32_0 : i32, i32
  }
  func.func @transform_5(%arg0: i32) -> (i32, i32) {
    %c0_i32 = arith.constant 0 : i32
    %c0_i32_0 = arith.constant 0 : i32
    %c0_i32_1 = arith.constant 0 : i32
    return %c0_i32, %c0_i32_0 : i32, i32
  }
  func.func @transform_6(%arg0: i32) -> (i32, i32) {
    %c0_i32 = arith.constant 0 : i32
    %c0_i32_0 = arith.constant 0 : i32
    return %arg0, %c0_i32 : i32, i32
  }
}

</mosaic_0001>

<bundles_post_ra>
// kernel: base_model_forward.1
= control target key start
LH: loop header
LB: loop body
LE: loop exit
PB: predicated region body
PF: predicated region fallthrough
CT: control target
= control target key end

     0   :  { %vm287_vm0 = vcmask 523264   ;;  %s2776_s1 = inlined_call_operand.vmem [shape: bf16[64,128], index: 1, kind: input, shape index: {}]   ;;  %s2777_s0 = inlined_call_operand.vmem [shape: bf16[512,64], index: 0, kind: input, shape index: {}]   ;;  %s2778_s4 = inlined_call_operand.vmem [shape: bf16[128,128], index: 4, kind: input, shape index: {}]   ;;  %s2779_s2 = inlined_call_operand.vmem [shape: f32[1,128], index: 2, kind: input, shape index: {}]   ;;  %s2780_s3 = inlined_call_operand.vmem [shape: f32[1,128], index: 3, kind: input, shape index: {}]   ;;  %s2781_s5 = inlined_call_operand.vmem [shape: f32[1,128], index: 5, kind: input, shape index: {}]   ;;  %s2782_s6 = inlined_call_operand.vmem [shape: bf16[512,128], index: 6, kind: output, shape index: {}]  }
   0x1   :  { %v2230_v0 = vld [vmem:[%s2776_s1] sm:$0xff]   ;;  %v2231_v1 = vld [vmem:[%s2776_s1 + $0x8] sm:$0xff]   ;;  %v2232_v2 = vld [vmem:[%s2776_s1 + $0x10] sm:$0xff]  }
   0x2   :  { %2062 = vmatprep.subr.bf16.mxu0 %v2230_v0  ;;  %v2234_v3 = vld [vmem:[%s2777_s0] sm:$0xff]   ;;  %v2233_v4 = vld [vmem:[%s2776_s1 + $0x18] sm:$0xff]   ;;  %v2235_v5 = vld [vmem:[%s2777_s0 + $0x8] sm:$0xff]  }
   0x3   :  { %2063 = vmatpush3.bf16.msra.mxu0 %v2230_v0  ;;  %2070 = vmatprep.mubr.msk.bf16.mxu0 %vm287_vm0, %v2234_v3  ;;  %v2236_v6 = vld [vmem:[%s2777_s0 + $0x10] sm:$0xff]   ;;  %v2237_v7 = vld [vmem:[%s2777_s0 + $0x18] sm:$0xff]   ;;  %v2238_v8 = vld [vmem:[%s2777_s0 + $0x20] sm:$0xff]  }
   0x4   :  { %2064 = vmatprep.subr.bf16.mxu0 %v2231_v1  ;;  %v2239_v9 = vld [vmem:[%s2777_s0 + $0x28] sm:$0xff]   ;;  %v2240_v10 = vld [vmem:[%s2777_s0 + $0x30] sm:$0xff]   ;;  %v2266_v11 = vld [vmem:[%s2778_s4] sm:$0xff]  }
   0x5   :  { %v2267_v12 = vld [vmem:[%s2778_s4 + $0x8] sm:$0xff]   ;;  %v2241_v13 = vld [vmem:[%s2777_s0 + $0x38] sm:$0xff]   ;;  %2214 = vmatprep.subr.bf16.mxu1 %v2266_v11  ;;  %v2242_v14 = vld [vmem:[%s2777_s0 + $0x40] sm:$0xff]  }
   0x6   :  { %2222 = vmatpush3.bf16.msra.mxu1 %v2266_v11  ;;  %v2268_v15 = vld [vmem:[%s2778_s4 + $0x10] sm:$0xff]   ;;  %v2269_v16 = vld [vmem:[%s2778_s4 + $0x18] sm:$0xff]   ;;  %v2243_v17 = vld [vmem:[%s2777_s0 + $0x48] sm:$0xff]  }
   0x7   :  { %2065 = vmatpush3.bf16.msra.mxu0 %v2231_v1  ;;  %2215 = vmatprep.subr.bf16.mxu1 %v2267_v12  ;;  %v2244_v18 = vld [vmem:[%s2777_s0 + $0x50] sm:$0xff]   ;;  %v2270_v19 = vld [vmem:[%s2778_s4 + $0x20] sm:$0xff]   ;;  %v2245_v20 = vld [vmem:[%s2777_s0 + $0x58] sm:$0xff]  }
   0x8   :  { %2066 = vmatprep.subr.bf16.mxu0 %v2232_v2  ;;  %v2246_v21 = vld [vmem:[%s2777_s0 + $0x60] sm:$0xff]   ;;  %v2247_v22 = vld [vmem:[%s2777_s0 + $0x68] sm:$0xff]   ;;  %v2248_v23 = vld [vmem:[%s2777_s0 + $0x70] sm:$0xff]  }
   0x9   :  { %v2249_v24 = vld [vmem:[%s2777_s0 + $0x78] sm:$0xff]   ;;  %v2250_v25 = vld [vmem:[%s2777_s0 + $0x80] sm:$0xff]   ;;  %v2251_v26 = vld [vmem:[%s2777_s0 + $0x88] sm:$0xff]  }
   0xa   :  { %2223 = vmatpush3.bf16.msra.mxu1 %v2267_v12  ;;  %v2252_v27 = vld [vmem:[%s2777_s0 + $0x90] sm:$0xff]   ;;  %v2253_v28 = vld [vmem:[%s2777_s0 + $0x98] sm:$0xff]   ;;  %v2254_v29 = vld [vmem:[%s2777_s0 + $0xa0] sm:$0xff]  }
   0xb   :  { %2067 = vmatpush3.bf16.msra.mxu0 %v2232_v2  ;;  %2216 = vmatprep.subr.bf16.mxu1 %v2268_v15  ;;  %v2255_v30 = vld [vmem:[%s2777_s0 + $0xa8] sm:$0xff]   ;;  %v2256_v31 = vld [vmem:[%s2777_s0 + $0xb0] sm:$0xff]   ;;  %v2257_v33 = vld [vmem:[%s2777_s0 + $0xb8] sm:$0xff]  }
   0xc   :  { %2068 = vmatprep.subr.bf16.mxu0 %v2233_v4  ;;  %v2271_v32 = vld [vmem:[%s2778_s4 + $0x28] sm:$0xff]   ;;  %v2258_v34 = vld [vmem:[%s2777_s0 + $0xc0] sm:$0xff]   ;;  %v2272_v35 = vld [vmem:[%s2778_s4 + $0x30] sm:$0xff]  }
   0xd   :  { %v2273_v36 = vld [vmem:[%s2778_s4 + $0x38] sm:$0xff]   ;;  %v2259_v37 = vld [vmem:[%s2777_s0 + $0xc8] sm:$0xff]   ;;  %v2260_v38 = vld [vmem:[%s2777_s0 + $0xd0] sm:$0xff]  }
   0xe   :  { %2224 = vmatpush3.bf16.msra.mxu1 %v2268_v15  ;;  %v2261_v39 = vld [vmem:[%s2777_s0 + $0xd8] sm:$0xff]   ;;  %v2262_v40 = vld [vmem:[%s2777_s0 + $0xe0] sm:$0xff]   ;;  %v2263_v41 = vld [vmem:[%s2777_s0 + $0xe8] sm:$0xff]  }
   0xf   :  { %2069 = vmatpush3.bf16.msra.mxu0 %v2233_v4  ;;  %2217 = vmatprep.subr.bf16.mxu1 %v2269_v16  ;;  %v2264_v42 = vld [vmem:[%s2777_s0 + $0xf0] sm:$0xff]   ;;  %v2265_v43 = vld [vmem:[%s2777_s0 + $0xf8] sm:$0xff]   ;;  %v2476_v44 = vld [vmem:[%s2779_s2] ss:$0 sm:$0xff] }
  0x10   :  { %2134 = vmatprep.subr.bf16.mxu0 %v2266_v11  ;;  %v2481_v46 = vld [vmem:[%s2780_s3] ss:$0 sm:$0xff] }
  0x12   :  { %2071 = vmatmul.mubr.msk.bf16.vlgmr.msra.gmra.mrb[0].mxu0 %vm287_vm0, %v2235_v5  ;;  %2225 = vmatpush3.bf16.msra.mxu1 %v2269_v16 }
  0x13   :  { %2074 = vmatprep.mubr.msk.bf16.mxu0 %vm287_vm0, %v2236_v6  ;;  %2135 = vmatpush3.bf16.msra.mxu0 %v2266_v11 }
  0x14   :  { %2136 = vmatprep.subr.bf16.mxu0 %v2267_v12  ;;  %2218 = vmatprep.subr.bf16.mxu1 %v2270_v19 }
  0x16   :  { %2226 = vmatpush3.bf16.msra.mxu1 %v2270_v19 }
  0x17   :  { %2137 = vmatpush3.bf16.msra.mxu0 %v2267_v12  ;;  %2219 = vmatprep.subr.bf16.mxu1 %v2271_v32 }
  0x18   :  { %2138 = vmatprep.subr.bf16.mxu0 %v2268_v15 }
  0x1a   :  { %2075 = vmatmul.mubr.msk.bf16.gmra.mrb[4].mxu0 %vm287_vm0, %v2237_v7  ;;  %2227 = vmatpush3.bf16.msra.mxu1 %v2271_v32 }
  0x1b   :  { %2078 = vmatprep.mubr.msk.bf16.mxu0 %vm287_vm0, %v2238_v8  ;;  %2139 = vmatpush3.bf16.msra.mxu0 %v2268_v15 }
  0x1c   :  { %2140 = vmatprep.subr.bf16.mxu0 %v2269_v16  ;;  %2220 = vmatprep.subr.bf16.mxu1 %v2272_v35 }
  0x1e   :  { %2228 = vmatpush3.bf16.msra.mxu1 %v2272_v35 }
  0x1f   :  { %2141 = vmatpush3.bf16.msra.mxu0 %v2269_v16  ;;  %2221 = vmatprep.subr.bf16.mxu1 %v2273_v36 }
  0x20   :  { %2142 = vmatprep.subr.bf16.mxu0 %v2270_v19 }
  0x22   :  { %2079 = vmatmul.mubr.msk.bf16.gmra.mrb[8].mxu0 %vm287_vm0, %v2239_v9  ;;  %2229 = vmatpush3.bf16.msra.mxu1 %v2273_v36 }
  0x23   :  { %2082 = vmatprep.mubr.msk.bf16.mxu0 %vm287_vm0, %v2240_v10  ;;  %2143 = vmatpush3.bf16.msra.mxu0 %v2270_v19 }
  0x24   :  { %2144 = vmatprep.subr.bf16.mxu0 %v2271_v32 }
  0x27   :  { %2145 = vmatpush3.bf16.msra.mxu0 %v2271_v32 }
  0x28   :  { %2146 = vmatprep.subr.bf16.mxu0 %v2272_v35 }
  0x2a   :  { %2083 = vmatmul.mubr.msk.bf16.gmra.mrb[12].mxu0 %vm287_vm0, %v2241_v13 }
  0x2b   :  { %2086 = vmatprep.mubr.msk.bf16.mxu0 %vm287_vm0, %v2242_v14  ;;  %2147 = vmatpush3.bf16.msra.mxu0 %v2272_v35 }
  0x2c   :  { %2148 = vmatprep.subr.bf16.mxu0 %v2273_v36 }
  0x2f   :  { %2149 = vmatpush3.bf16.msra.mxu0 %v2273_v36 }
  0x32   :  { %2087 = vmatmul.mubr.msk.bf16.gmra.mrb[16].mxu0 %vm287_vm0, %v2243_v17 }
  0x33   :  { %2090 = vmatprep.mubr.msk.bf16.mxu0 %vm287_vm0, %v2244_v18 }
  0x3a   :  { %2091 = vmatmul.mubr.msk.bf16.gmra.mrb[20].mxu0 %vm287_vm0, %v2245_v20 }
  0x3b   :  { %2094 = vmatprep.mubr.msk.bf16.mxu0 %vm287_vm0, %v2246_v21 }
  0x42   :  { %2095 = vmatmul.mubr.msk.bf16.gmra.mrb[24].mxu0 %vm287_vm0, %v2247_v22 }
  0x43   :  { %2098 = vmatprep.mubr.msk.bf16.mxu0 %vm287_vm0, %v2248_v23 }
  0x4a   :  { %2099 = vmatmul.mubr.msk.bf16.gmra.mrb[28].mxu0 %vm287_vm0, %v2249_v24 }
  0x4b   :  { %2102 = vmatprep.mubr.msk.bf16.mxu0 %vm287_vm0, %v2250_v25 }
  0x52   :  { %2103 = vmatmul.mubr.msk.bf16.gmra.mrb[32].mxu0 %vm287_vm0, %v2251_v26 }
  0x53   :  { %2106 = vmatprep.mubr.msk.bf16.mxu0 %vm287_vm0, %v2252_v27 }
  0x5a   :  { %2107 = vmatmul.mubr.msk.bf16.gmra.mrb[36].mxu0 %vm287_vm0, %v2253_v28 }
  0x5b   :  { %2110 = vmatprep.mubr.msk.bf16.mxu0 %vm287_vm0, %v2254_v29 }
  0x62   :  { %2111 = vmatmul.mubr.msk.bf16.gmra.mrb[40].mxu0 %vm287_vm0, %v2255_v30 }
  0x63   :  { %2114 = vmatprep.mubr.msk.bf16.mxu0 %vm287_vm0, %v2256_v31 }
  0x6a   :  { %2115 = vmatmul.mubr.msk.bf16.gmra.mrb[44].mxu0 %vm287_vm0, %v2257_v33 }
  0x6b   :  { %2118 = vmatprep.mubr.msk.bf16.mxu0 %vm287_vm0, %v2258_v34 }
  0x72   :  { %2119 = vmatmul.mubr.msk.bf16.gmra.mrb[48].mxu0 %vm287_vm0, %v2259_v37 }
  0x73   :  { %2122 = vmatprep.mubr.msk.bf16.mxu0 %vm287_vm0, %v2260_v38 }
  0x7a   :  { %2123 = vmatmul.mubr.msk.bf16.gmra.mrb[52].mxu0 %vm287_vm0, %v2261_v39 }
  0x7b   :  { %2126 = vmatprep.mubr.msk.bf16.mxu0 %vm287_vm0, %v2262_v40 }
  0x82   :  { %2127 = vmatmul.mubr.msk.bf16.gmra.mrb[56].mxu0 %vm287_vm0, %v2263_v41 }
  0x83   :  { %2130 = vmatprep.mubr.msk.bf16.mxu0 %vm287_vm0, %v2264_v42 }
  0x8a   :  { %2131 = vmatmul.mubr.msk.bf16.gmra.mrb[60].mxu0 %vm287_vm0, %v2265_v43 }
  0xe5   :  { %v2072_v45 = vpop.f32.mrb[0].mxu0 }
  0xe6   :  { %v427_v47 = vadd.f32 %v2072_v45, %v2476_v44  ;;  %v418_v48 = vpop.f32.mrb[1].mxu0 }
  0xe7   :  { %v419_v49 = vadd.f32 %v2476_v44, %v418_v48  ;;  %v2073_v50 = vpop.f32.mrb[2].mxu0 }
  0xe8   :  { %v746_v51 = vmul.f32 %v2481_v46, %v427_v47  ;;  %v430_v52 = vadd.f32 %v2073_v50, %v2476_v44  ;;  %v421_v53 = vpop.f32.mrb[3].mxu0  ;;  %vm675_vm1 = vcmp.ge.f32.partialorder %v427_v47, 0.0 }
  0xe9   :  { %v744_v54 = vmul.f32 %v2481_v46, %v419_v49  ;;  %v422_v55 = vadd.f32 %v2476_v44, %v421_v53  ;;  %vm673_vm2 = vcmp.ge.f32.partialorder %v419_v49, 0.0 }
  0xea   :  { %vm676_vm3 = vcmp.ge.f32.partialorder %v430_v52, 0.0  ;;  %v747_v56 = vmul.f32 %v2481_v46, %v430_v52  ;;  %v810_v58 = vsel %vm675_vm1, %v427_v47, %v746_v51 }
  0xeb   :  { %vm674_vm4 = vcmp.ge.f32.partialorder %v422_v55, 0.0  ;;  %v745_v57 = vmul.f32 %v2481_v46, %v422_v55  ;;  %v808_v62 = vsel %vm673_vm2, %v419_v49, %v744_v54 }
  0xec   :  { %v811_v59 = vsel %vm676_vm3, %v430_v52, %v747_v56 }
  0xed   :  { %v873_v60 = vpack.c.bf16 %v811_v59, %v810_v58  ;;  %v2076_v61 = vpop.f32.mrb[4].mxu0  ;;  %v809_v63 = vsel %vm674_vm4, %v422_v55, %v745_v57 }
  0xee   :  { %v443_v0 = vadd.f32 %v2076_v61, %v2476_v44  ;;  %v434_v1 = vpop.f32.mrb[5].mxu0  ;;  %v872_v2 = vpack.c.bf16 %v809_v63, %v808_v62 }
  0xef   :  { %v435_v3 = vadd.f32 %v2476_v44, %v434_v1  ;;  %v2077_v4 = vpop.f32.mrb[6].mxu0 }
  0xf0   :  { %v750_v5 = vmul.f32 %v2481_v46, %v443_v0  ;;  %v446_v6 = vadd.f32 %v2077_v4, %v2476_v44  ;;  %v437_v7 = vpop.f32.mrb[7].mxu0  ;;  %2150 = vmatprep.mubr.bf16.mxu0 %v872_v2  ;;  %vm679_vm5 = vcmp.ge.f32.partialorder %v443_v0, 0.0 }
  0xf1   :  { %v748_v8 = vmul.f32 %v2481_v46, %v435_v3  ;;  %v438_v9 = vadd.f32 %v2476_v44, %v437_v7  ;;  %2151 = vmatmul.mubr.bf16.vlgmr.msra.gmra.mrb[64].mxu0 %v873_v60  ;;  %vm677_vm7 = vcmp.ge.f32.partialorder %v435_v3, 0.0 }
  0xf2   :  { %vm680_vm6 = vcmp.ge.f32.partialorder %v446_v6, 0.0  ;;  %v751_v10 = vmul.f32 %v2481_v46, %v446_v6  ;;  %v814_v12 = vsel %vm679_vm5, %v443_v0, %v750_v5 }
  0xf3   :  { %v749_v11 = vmul.f32 %v2481_v46, %v438_v9  ;;  %vm678_vm8 = vcmp.ge.f32.partialorder %v438_v9, 0.0  ;;  %v812_v15 = vsel %vm677_vm7, %v435_v3, %v748_v8 }
  0xf4   :  { %v815_v13 = vsel %vm680_vm6, %v446_v6, %v751_v10 }
  0xf5   :  { %v2080_v14 = vpop.f32.mrb[8].mxu0  ;;  %v813_v16 = vsel %vm678_vm8, %v438_v9, %v749_v11  ;;  %v875_v17 = vpack.c.bf16 %v815_v13, %v814_v12 }
  0xf6   :  { %v459_v18 = vadd.f32 %v2080_v14, %v2476_v44  ;;  %v450_v19 = vpop.f32.mrb[9].mxu0  ;;  %v874_v20 = vpack.c.bf16 %v813_v16, %v812_v15 }
  0xf7   :  { %v451_v21 = vadd.f32 %v2476_v44, %v450_v19  ;;  %v2081_v22 = vpop.f32.mrb[10].mxu0 }
  0xf8   :  { %v754_v23 = vmul.f32 %v2481_v46, %v459_v18  ;;  %v462_v24 = vadd.f32 %v2081_v22, %v2476_v44  ;;  %v453_v25 = vpop.f32.mrb[11].mxu0  ;;  %2154 = vmatprep.mubr.bf16.mxu1 %v874_v20  ;;  %vm683_vm9 = vcmp.ge.f32.partialorder %v459_v18, 0.0 }
  0xf9   :  { %v752_v26 = vmul.f32 %v2481_v46, %v451_v21  ;;  %v454_v27 = vadd.f32 %v2476_v44, %v453_v25  ;;  %2155 = vmatmul.mubr.bf16.vlgmr.msra.gmra.mrb[0].mxu1 %v875_v17  ;;  %vm681_vm10 = vcmp.ge.f32.partialorder %v451_v21, 0.0 }
  0xfa   :  { %vm684_vm11 = vcmp.ge.f32.partialorder %v462_v24, 0.0  ;;  %v755_v28 = vmul.f32 %v2481_v46, %v462_v24  ;;  %v818_v30 = vsel %vm683_vm9, %v459_v18, %v754_v23 }
  0xfb   :  { %vm682_vm12 = vcmp.ge.f32.partialorder %v454_v27, 0.0  ;;  %v753_v29 = vmul.f32 %v2481_v46, %v454_v27  ;;  %v816_v33 = vsel %vm681_vm10, %v451_v21, %v752_v26 }
  0xfc   :  { %v819_v31 = vsel %vm684_vm11, %v462_v24, %v755_v28 }
  0xfd   :  { %v2084_v32 = vpop.f32.mrb[12].mxu0  ;;  %v817_v34 = vsel %vm682_vm12, %v454_v27, %v753_v29  ;;  %v877_v35 = vpack.c.bf16 %v819_v31, %v818_v30 }
  0xfe   :  { %v475_v36 = vadd.f32 %v2084_v32, %v2476_v44  ;;  %v466_v37 = vpop.f32.mrb[13].mxu0  ;;  %v876_v38 = vpack.c.bf16 %v817_v34, %v816_v33 }
  0xff   :  { %v467_v39 = vadd.f32 %v2476_v44, %v466_v37  ;;  %v2085_v40 = vpop.f32.mrb[14].mxu0 }
 0x100   :  { %v758_v41 = vmul.f32 %v2481_v46, %v475_v36  ;;  %v478_v42 = vadd.f32 %v2085_v40, %v2476_v44  ;;  %v469_v43 = vpop.f32.mrb[15].mxu0  ;;  %2158 = vmatprep.mubr.bf16.mxu1 %v876_v38  ;;  %vm687_vm13 = vcmp.ge.f32.partialorder %v475_v36, 0.0 }
 0x101   :  { %v756_v45 = vmul.f32 %v2481_v46, %v467_v39  ;;  %v470_v47 = vadd.f32 %v2476_v44, %v469_v43  ;;  %2159 = vmatmul.mubr.bf16.gmra.mrb[4].mxu1 %v877_v35  ;;  %vm685_vm14 = vcmp.ge.f32.partialorder %v467_v39, 0.0 }
 0x102   :  { %vm688_vm15 = vcmp.ge.f32.partialorder %v478_v42, 0.0  ;;  %v759_v48 = vmul.f32 %v2481_v46, %v478_v42  ;;  %v822_v50 = vsel %vm687_vm13, %v475_v36, %v758_v41 }
 0x103   :  { %vm686_vm0 = vcmp.ge.f32.partialorder %v470_v47, 0.0  ;;  %v757_v49 = vmul.f32 %v2481_v46, %v470_v47  ;;  %v820_v53 = vsel %vm685_vm14, %v467_v39, %v756_v45 }
 0x104   :  { %v823_v51 = vsel %vm688_vm15, %v478_v42, %v759_v48 }
 0x105   :  { %v2088_v52 = vpop.f32.mrb[16].mxu0  ;;  %v821_v54 = vsel %vm686_vm0, %v470_v47, %v757_v49  ;;  %v879_v55 = vpack.c.bf16 %v823_v51, %v822_v50 }
 0x106   :  { %v491_v56 = vadd.f32 %v2088_v52, %v2476_v44  ;;  %v482_v57 = vpop.f32.mrb[17].mxu0  ;;  %v878_v58 = vpack.c.bf16 %v821_v54, %v820_v53 }
 0x107   :  { %v483_v59 = vadd.f32 %v2476_v44, %v482_v57  ;;  %v2089_v60 = vpop.f32.mrb[18].mxu0 }
 0x108   :  { %v762_v61 = vmul.f32 %v2481_v46, %v491_v56  ;;  %v494_v62 = vadd.f32 %v2089_v60, %v2476_v44  ;;  %v485_v63 = vpop.f32.mrb[19].mxu0  ;;  %2162 = vmatprep.mubr.bf16.mxu1 %v878_v58  ;;  %vm691_vm1 = vcmp.ge.f32.partialorder %v491_v56, 0.0 }
 0x109   :  { %v760_v0 = vmul.f32 %v2481_v46, %v483_v59  ;;  %v486_v1 = vadd.f32 %v2476_v44, %v485_v63  ;;  %2163 = vmatmul.mubr.bf16.gmra.mrb[8].mxu1 %v879_v55  ;;  %vm689_vm2 = vcmp.ge.f32.partialorder %v483_v59, 0.0 }
 0x10a   :  { %vm692_vm3 = vcmp.ge.f32.partialorder %v494_v62, 0.0  ;;  %v763_v2 = vmul.f32 %v2481_v46, %v494_v62  ;;  %v826_v4 = vsel %vm691_vm1, %v491_v56, %v762_v61 }
 0x10b   :  { %vm690_vm4 = vcmp.ge.f32.partialorder %v486_v1, 0.0  ;;  %v761_v3 = vmul.f32 %v2481_v46, %v486_v1  ;;  %v824_v7 = vsel %vm689_vm2, %v483_v59, %v760_v0 }
 0x10c   :  { %v827_v5 = vsel %vm692_vm3, %v494_v62, %v763_v2 }
 0x10d   :  { %v2092_v6 = vpop.f32.mrb[20].mxu0  ;;  %v825_v8 = vsel %vm690_vm4, %v486_v1, %v761_v3  ;;  %v881_v9 = vpack.c.bf16 %v827_v5, %v826_v4 }
 0x10e   :  { %v507_v10 = vadd.f32 %v2092_v6, %v2476_v44  ;;  %v498_v11 = vpop.f32.mrb[21].mxu0  ;;  %v880_v12 = vpack.c.bf16 %v825_v8, %v824_v7 }
 0x10f   :  { %v499_v13 = vadd.f32 %v2476_v44, %v498_v11  ;;  %v2093_v14 = vpop.f32.mrb[22].mxu0 }
 0x110   :  { %v766_v15 = vmul.f32 %v2481_v46, %v507_v10  ;;  %v510_v16 = vadd.f32 %v2093_v14, %v2476_v44  ;;  %v501_v17 = vpop.f32.mrb[23].mxu0  ;;  %2166 = vmatprep.mubr.bf16.mxu1 %v880_v12  ;;  %vm695_vm5 = vcmp.ge.f32.partialorder %v507_v10, 0.0 }
 0x111   :  { %v764_v18 = vmul.f32 %v2481_v46, %v499_v13  ;;  %v502_v19 = vadd.f32 %v2476_v44, %v501_v17  ;;  %2167 = vmatmul.mubr.bf16.gmra.mrb[12].mxu1 %v881_v9  ;;  %vm693_vm6 = vcmp.ge.f32.partialorder %v499_v13, 0.0 }
 0x112   :  { %vm696_vm7 = vcmp.ge.f32.partialorder %v510_v16, 0.0  ;;  %v767_v20 = vmul.f32 %v2481_v46, %v510_v16  ;;  %v830_v22 = vsel %vm695_vm5, %v507_v10, %v766_v15 }
 0x113   :  { %vm694_vm8 = vcmp.ge.f32.partialorder %v502_v19, 0.0  ;;  %v765_v21 = vmul.f32 %v2481_v46, %v502_v19  ;;  %v828_v25 = vsel %vm693_vm6, %v499_v13, %v764_v18 }
 0x114   :  { %v831_v23 = vsel %vm696_vm7, %v510_v16, %v767_v20 }
 0x115   :  { %v2096_v24 = vpop.f32.mrb[24].mxu0  ;;  %v829_v26 = vsel %vm694_vm8, %v502_v19, %v765_v21  ;;  %v883_v27 = vpack.c.bf16 %v831_v23, %v830_v22 }
 0x116   :  { %v523_v28 = vadd.f32 %v2096_v24, %v2476_v44  ;;  %v514_v29 = vpop.f32.mrb[25].mxu0  ;;  %v882_v30 = vpack.c.bf16 %v829_v26, %v828_v25 }
 0x117   :  { %v515_v31 = vadd.f32 %v2476_v44, %v514_v29  ;;  %v2097_v32 = vpop.f32.mrb[26].mxu0 }
 0x118   :  { %v770_v33 = vmul.f32 %v2481_v46, %v523_v28  ;;  %v526_v34 = vadd.f32 %v2097_v32, %v2476_v44  ;;  %v517_v35 = vpop.f32.mrb[27].mxu0  ;;  %2170 = vmatprep.mubr.bf16.mxu1 %v882_v30  ;;  %vm699_vm9 = vcmp.ge.f32.partialorder %v523_v28, 0.0 }
 0x119   :  { %v768_v36 = vmul.f32 %v2481_v46, %v515_v31  ;;  %v518_v37 = vadd.f32 %v2476_v44, %v517_v35  ;;  %2171 = vmatmul.mubr.bf16.gmra.mrb[16].mxu1 %v883_v27  ;;  %vm697_vm10 = vcmp.ge.f32.partialorder %v515_v31, 0.0 }
 0x11a   :  { %vm700_vm11 = vcmp.ge.f32.partialorder %v526_v34, 0.0  ;;  %v771_v38 = vmul.f32 %v2481_v46, %v526_v34  ;;  %v834_v40 = vsel %vm699_vm9, %v523_v28, %v770_v33 }
 0x11b   :  { %vm698_vm12 = vcmp.ge.f32.partialorder %v518_v37, 0.0  ;;  %v769_v39 = vmul.f32 %v2481_v46, %v518_v37  ;;  %v832_v43 = vsel %vm697_vm10, %v515_v31, %v768_v36 }
 0x11c   :  { %v835_v41 = vsel %vm700_vm11, %v526_v34, %v771_v38 }
 0x11d   :  { %v2100_v42 = vpop.f32.mrb[28].mxu0  ;;  %v833_v45 = vsel %vm698_vm12, %v518_v37, %v769_v39  ;;  %v885_v47 = vpack.c.bf16 %v835_v41, %v834_v40 }
 0x11e   :  { %v539_v48 = vadd.f32 %v2100_v42, %v2476_v44  ;;  %v530_v49 = vpop.f32.mrb[29].mxu0  ;;  %v884_v50 = vpack.c.bf16 %v833_v45, %v832_v43 }
 0x11f   :  { %v531_v51 = vadd.f32 %v2476_v44, %v530_v49  ;;  %v2101_v52 = vpop.f32.mrb[30].mxu0 }
 0x120   :  { %v774_v53 = vmul.f32 %v2481_v46, %v539_v48  ;;  %v542_v54 = vadd.f32 %v2101_v52, %v2476_v44  ;;  %v533_v55 = vpop.f32.mrb[31].mxu0  ;;  %2174 = vmatprep.mubr.bf16.mxu1 %v884_v50  ;;  %vm703_vm13 = vcmp.ge.f32.partialorder %v539_v48, 0.0 }
 0x121   :  { %v772_v56 = vmul.f32 %v2481_v46, %v531_v51  ;;  %v534_v57 = vadd.f32 %v2476_v44, %v533_v55  ;;  %2175 = vmatmul.mubr.bf16.gmra.mrb[20].mxu1 %v885_v47  ;;  %vm701_vm14 = vcmp.ge.f32.partialorder %v531_v51, 0.0 }
 0x122   :  { %vm704_vm15 = vcmp.ge.f32.partialorder %v542_v54, 0.0  ;;  %v775_v58 = vmul.f32 %v2481_v46, %v542_v54  ;;  %v838_v60 = vsel %vm703_vm13, %v539_v48, %v774_v53 }
 0x123   :  { %vm702_vm0 = vcmp.ge.f32.partialorder %v534_v57, 0.0  ;;  %v773_v59 = vmul.f32 %v2481_v46, %v534_v57  ;;  %v836_v63 = vsel %vm701_vm14, %v531_v51, %v772_v56 }
 0x124   :  { %v839_v61 = vsel %vm704_vm15, %v542_v54, %v775_v58 }
 0x125   :  { %v2104_v62 = vpop.f32.mrb[32].mxu0  ;;  %v837_v0 = vsel %vm702_vm0, %v534_v57, %v773_v59  ;;  %v887_v1 = vpack.c.bf16 %v839_v61, %v838_v60 }
 0x126   :  { %v555_v2 = vadd.f32 %v2104_v62, %v2476_v44  ;;  %v546_v3 = vpop.f32.mrb[33].mxu0  ;;  %v886_v4 = vpack.c.bf16 %v837_v0, %v836_v63 }
 0x127   :  { %v547_v5 = vadd.f32 %v2476_v44, %v546_v3  ;;  %v2105_v6 = vpop.f32.mrb[34].mxu0 }
 0x128   :  { %v778_v7 = vmul.f32 %v2481_v46, %v555_v2  ;;  %v558_v8 = vadd.f32 %v2105_v6, %v2476_v44  ;;  %v549_v9 = vpop.f32.mrb[35].mxu0  ;;  %2178 = vmatprep.mubr.bf16.mxu1 %v886_v4  ;;  %vm707_vm1 = vcmp.ge.f32.partialorder %v555_v2, 0.0 }
 0x129   :  { %v776_v10 = vmul.f32 %v2481_v46, %v547_v5  ;;  %v550_v11 = vadd.f32 %v2476_v44, %v549_v9  ;;  %2179 = vmatmul.mubr.bf16.gmra.mrb[24].mxu1 %v887_v1  ;;  %vm705_vm2 = vcmp.ge.f32.partialorder %v547_v5, 0.0 }
 0x12a   :  { %vm708_vm3 = vcmp.ge.f32.partialorder %v558_v8, 0.0  ;;  %v779_v12 = vmul.f32 %v2481_v46, %v558_v8  ;;  %v842_v14 = vsel %vm707_vm1, %v555_v2, %v778_v7 }
 0x12b   :  { %vm706_vm4 = vcmp.ge.f32.partialorder %v550_v11, 0.0  ;;  %v777_v13 = vmul.f32 %v2481_v46, %v550_v11  ;;  %v840_v17 = vsel %vm705_vm2, %v547_v5, %v776_v10 }
 0x12c   :  { %v843_v15 = vsel %vm708_vm3, %v558_v8, %v779_v12 }
 0x12d   :  { %v2108_v16 = vpop.f32.mrb[36].mxu0  ;;  %v841_v18 = vsel %vm706_vm4, %v550_v11, %v777_v13  ;;  %v889_v19 = vpack.c.bf16 %v843_v15, %v842_v14 }
 0x12e   :  { %v571_v20 = vadd.f32 %v2108_v16, %v2476_v44  ;;  %v562_v21 = vpop.f32.mrb[37].mxu0  ;;  %v888_v22 = vpack.c.bf16 %v841_v18, %v840_v17 }
 0x12f   :  { %v563_v23 = vadd.f32 %v2476_v44, %v562_v21  ;;  %v2109_v24 = vpop.f32.mrb[38].mxu0 }
 0x130   :  { %v782_v25 = vmul.f32 %v2481_v46, %v571_v20  ;;  %v574_v26 = vadd.f32 %v2109_v24, %v2476_v44  ;;  %v565_v27 = vpop.f32.mrb[39].mxu0  ;;  %2182 = vmatprep.mubr.bf16.mxu1 %v888_v22  ;;  %vm711_vm5 = vcmp.ge.f32.partialorder %v571_v20, 0.0 }
 0x131   :  { %v780_v28 = vmul.f32 %v2481_v46, %v563_v23  ;;  %v566_v29 = vadd.f32 %v2476_v44, %v565_v27  ;;  %2183 = vmatmul.mubr.bf16.gmra.mrb[28].mxu1 %v889_v19  ;;  %vm709_vm6 = vcmp.ge.f32.partialorder %v563_v23, 0.0 }
 0x132   :  { %vm712_vm7 = vcmp.ge.f32.partialorder %v574_v26, 0.0  ;;  %v783_v30 = vmul.f32 %v2481_v46, %v574_v26  ;;  %v846_v32 = vsel %vm711_vm5, %v571_v20, %v782_v25 }
 0x133   :  { %vm710_vm8 = vcmp.ge.f32.partialorder %v566_v29, 0.0  ;;  %v781_v31 = vmul.f32 %v2481_v46, %v566_v29  ;;  %v844_v35 = vsel %vm709_vm6, %v563_v23, %v780_v28 }
 0x134   :  { %v847_v33 = vsel %vm712_vm7, %v574_v26, %v783_v30 }
 0x135   :  { %v2112_v34 = vpop.f32.mrb[40].mxu0  ;;  %v845_v36 = vsel %vm710_vm8, %v566_v29, %v781_v31  ;;  %v891_v37 = vpack.c.bf16 %v847_v33, %v846_v32 }
 0x136   :  { %v587_v38 = vadd.f32 %v2112_v34, %v2476_v44  ;;  %v578_v39 = vpop.f32.mrb[41].mxu0  ;;  %v890_v40 = vpack.c.bf16 %v845_v36, %v844_v35 }
 0x137   :  { %v579_v41 = vadd.f32 %v2476_v44, %v578_v39  ;;  %v2113_v42 = vpop.f32.mrb[42].mxu0 }
 0x138   :  { %v786_v43 = vmul.f32 %v2481_v46, %v587_v38  ;;  %v590_v45 = vadd.f32 %v2113_v42, %v2476_v44  ;;  %v581_v47 = vpop.f32.mrb[43].mxu0  ;;  %2186 = vmatprep.mubr.bf16.mxu1 %v890_v40  ;;  %vm715_vm9 = vcmp.ge.f32.partialorder %v587_v38, 0.0 }
 0x139   :  { %v784_v48 = vmul.f32 %v2481_v46, %v579_v41  ;;  %v582_v49 = vadd.f32 %v2476_v44, %v581_v47  ;;  %2187 = vmatmul.mubr.bf16.gmra.mrb[32].mxu1 %v891_v37  ;;  %vm713_vm10 = vcmp.ge.f32.partialorder %v579_v41, 0.0 }
 0x13a   :  { %vm716_vm11 = vcmp.ge.f32.partialorder %v590_v45, 0.0  ;;  %v787_v50 = vmul.f32 %v2481_v46, %v590_v45  ;;  %v850_v52 = vsel %vm715_vm9, %v587_v38, %v786_v43 }
 0x13b   :  { %vm714_vm12 = vcmp.ge.f32.partialorder %v582_v49, 0.0  ;;  %v785_v51 = vmul.f32 %v2481_v46, %v582_v49  ;;  %v848_v55 = vsel %vm713_vm10, %v579_v41, %v784_v48 }
 0x13c   :  { %v851_v53 = vsel %vm716_vm11, %v590_v45, %v787_v50 }
 0x13d   :  { %v2116_v54 = vpop.f32.mrb[44].mxu0  ;;  %v849_v56 = vsel %vm714_vm12, %v582_v49, %v785_v51  ;;  %v893_v57 = vpack.c.bf16 %v851_v53, %v850_v52 }
 0x13e   :  { %v603_v58 = vadd.f32 %v2116_v54, %v2476_v44  ;;  %v594_v59 = vpop.f32.mrb[45].mxu0  ;;  %v892_v60 = vpack.c.bf16 %v849_v56, %v848_v55 }
 0x13f   :  { %v595_v61 = vadd.f32 %v2476_v44, %v594_v59  ;;  %v2117_v62 = vpop.f32.mrb[46].mxu0 }
 0x140   :  { %v790_v63 = vmul.f32 %v2481_v46, %v603_v58  ;;  %v606_v0 = vadd.f32 %v2117_v62, %v2476_v44  ;;  %v597_v1 = vpop.f32.mrb[47].mxu0  ;;  %2190 = vmatprep.mubr.bf16.mxu1 %v892_v60  ;;  %vm719_vm13 = vcmp.ge.f32.partialorder %v603_v58, 0.0 }
 0x141   :  { %v788_v2 = vmul.f32 %v2481_v46, %v595_v61  ;;  %v598_v3 = vadd.f32 %v2476_v44, %v597_v1  ;;  %2191 = vmatmul.mubr.bf16.gmra.mrb[36].mxu1 %v893_v57  ;;  %vm717_vm14 = vcmp.ge.f32.partialorder %v595_v61, 0.0 }
 0x142   :  { %vm720_vm15 = vcmp.ge.f32.partialorder %v606_v0, 0.0  ;;  %v791_v4 = vmul.f32 %v2481_v46, %v606_v0  ;;  %v854_v6 = vsel %vm719_vm13, %v603_v58, %v790_v63 }
 0x143   :  { %vm718_vm0 = vcmp.ge.f32.partialorder %v598_v3, 0.0  ;;  %v789_v5 = vmul.f32 %v2481_v46, %v598_v3  ;;  %v852_v9 = vsel %vm717_vm14, %v595_v61, %v788_v2 }
 0x144   :  { %v855_v7 = vsel %vm720_vm15, %v606_v0, %v791_v4 }
 0x145   :  { %v2120_v8 = vpop.f32.mrb[48].mxu0  ;;  %v853_v10 = vsel %vm718_vm0, %v598_v3, %v789_v5  ;;  %v895_v11 = vpack.c.bf16 %v855_v7, %v854_v6 }
 0x146   :  { %v619_v12 = vadd.f32 %v2120_v8, %v2476_v44  ;;  %v610_v13 = vpop.f32.mrb[49].mxu0  ;;  %v894_v14 = vpack.c.bf16 %v853_v10, %v852_v9 }
 0x147   :  { %v611_v15 = vadd.f32 %v2476_v44, %v610_v13  ;;  %v2121_v16 = vpop.f32.mrb[50].mxu0 }
 0x148   :  { %v794_v17 = vmul.f32 %v2481_v46, %v619_v12  ;;  %v622_v18 = vadd.f32 %v2121_v16, %v2476_v44  ;;  %v613_v19 = vpop.f32.mrb[51].mxu0  ;;  %2194 = vmatprep.mubr.bf16.mxu1 %v894_v14  ;;  %vm723_vm1 = vcmp.ge.f32.partialorder %v619_v12, 0.0 }
 0x149   :  { %v792_v20 = vmul.f32 %v2481_v46, %v611_v15  ;;  %v614_v21 = vadd.f32 %v2476_v44, %v613_v19  ;;  %2195 = vmatmul.mubr.bf16.gmra.mrb[40].mxu1 %v895_v11  ;;  %vm721_vm2 = vcmp.ge.f32.partialorder %v611_v15, 0.0 }
 0x14a   :  { %vm724_vm3 = vcmp.ge.f32.partialorder %v622_v18, 0.0  ;;  %v795_v22 = vmul.f32 %v2481_v46, %v622_v18  ;;  %v858_v24 = vsel %vm723_vm1, %v619_v12, %v794_v17 }
 0x14b   :  { %vm722_vm4 = vcmp.ge.f32.partialorder %v614_v21, 0.0  ;;  %v793_v23 = vmul.f32 %v2481_v46, %v614_v21  ;;  %v856_v27 = vsel %vm721_vm2, %v611_v15, %v792_v20 }
 0x14c   :  { %v859_v25 = vsel %vm724_vm3, %v622_v18, %v795_v22 }
 0x14d   :  { %v2124_v26 = vpop.f32.mrb[52].mxu0  ;;  %v857_v28 = vsel %vm722_vm4, %v614_v21, %v793_v23  ;;  %v897_v29 = vpack.c.bf16 %v859_v25, %v858_v24 }
 0x14e   :  { %v635_v30 = vadd.f32 %v2124_v26, %v2476_v44  ;;  %v626_v31 = vpop.f32.mrb[53].mxu0  ;;  %v896_v32 = vpack.c.bf16 %v857_v28, %v856_v27 }
 0x14f   :  { %v627_v33 = vadd.f32 %v2476_v44, %v626_v31  ;;  %v2125_v34 = vpop.f32.mrb[54].mxu0 }
 0x150   :  { %v798_v35 = vmul.f32 %v2481_v46, %v635_v30  ;;  %v638_v36 = vadd.f32 %v2125_v34, %v2476_v44  ;;  %v629_v37 = vpop.f32.mrb[55].mxu0  ;;  %2198 = vmatprep.mubr.bf16.mxu1 %v896_v32  ;;  %vm727_vm5 = vcmp.ge.f32.partialorder %v635_v30, 0.0 }
 0x151   :  { %v796_v38 = vmul.f32 %v2481_v46, %v627_v33  ;;  %v630_v39 = vadd.f32 %v2476_v44, %v629_v37  ;;  %2199 = vmatmul.mubr.bf16.gmra.mrb[44].mxu1 %v897_v29  ;;  %vm725_vm6 = vcmp.ge.f32.partialorder %v627_v33, 0.0 }
 0x152   :  { %vm728_vm7 = vcmp.ge.f32.partialorder %v638_v36, 0.0  ;;  %v799_v40 = vmul.f32 %v2481_v46, %v638_v36  ;;  %v862_v42 = vsel %vm727_vm5, %v635_v30, %v798_v35 }
 0x153   :  { %vm726_vm8 = vcmp.ge.f32.partialorder %v630_v39, 0.0  ;;  %v797_v41 = vmul.f32 %v2481_v46, %v630_v39  ;;  %v860_v47 = vsel %vm725_vm6, %v627_v33, %v796_v38 }
 0x154   :  { %v863_v43 = vsel %vm728_vm7, %v638_v36, %v799_v40 }
 0x155   :  { %v2128_v45 = vpop.f32.mrb[56].mxu0  ;;  %v861_v48 = vsel %vm726_vm8, %v630_v39, %v797_v41  ;;  %v899_v49 = vpack.c.bf16 %v863_v43, %v862_v42 }
 0x156   :  { %v651_v50 = vadd.f32 %v2128_v45, %v2476_v44  ;;  %v642_v51 = vpop.f32.mrb[57].mxu0  ;;  %v898_v52 = vpack.c.bf16 %v861_v48, %v860_v47 }
 0x157   :  { %v643_v53 = vadd.f32 %v2476_v44, %v642_v51  ;;  %v2129_v54 = vpop.f32.mrb[58].mxu0 }
 0x158   :  { %v802_v55 = vmul.f32 %v2481_v46, %v651_v50  ;;  %v654_v56 = vadd.f32 %v2129_v54, %v2476_v44  ;;  %v645_v57 = vpop.f32.mrb[59].mxu0  ;;  %2202 = vmatprep.mubr.bf16.mxu1 %v898_v52  ;;  %vm731_vm9 = vcmp.ge.f32.partialorder %v651_v50, 0.0 }
 0x159   :  { %v800_v58 = vmul.f32 %v2481_v46, %v643_v53  ;;  %v646_v59 = vadd.f32 %v2476_v44, %v645_v57  ;;  %2203 = vmatmul.mubr.bf16.gmra.mrb[48].mxu1 %v899_v49  ;;  %vm729_vm10 = vcmp.ge.f32.partialorder %v643_v53, 0.0 }
 0x15a   :  { %vm732_vm11 = vcmp.ge.f32.partialorder %v654_v56, 0.0  ;;  %v803_v60 = vmul.f32 %v2481_v46, %v654_v56  ;;  %v866_v62 = vsel %vm731_vm9, %v651_v50, %v802_v55 }
 0x15b   :  { %vm730_vm12 = vcmp.ge.f32.partialorder %v646_v59, 0.0  ;;  %v801_v61 = vmul.f32 %v2481_v46, %v646_v59  ;;  %v864_v1 = vsel %vm729_vm10, %v643_v53, %v800_v58 }
 0x15c   :  { %v867_v63 = vsel %vm732_vm11, %v654_v56, %v803_v60 }
 0x15d   :  { %v2132_v0 = vpop.f32.mrb[60].mxu0  ;;  %v865_v2 = vsel %vm730_vm12, %v646_v59, %v801_v61  ;;  %v901_v3 = vpack.c.bf16 %v867_v63, %v866_v62 }
 0x15e   :  { %v667_v4 = vadd.f32 %v2132_v0, %v2476_v44  ;;  %v658_v5 = vpop.f32.mrb[61].mxu0  ;;  %v900_v6 = vpack.c.bf16 %v865_v2, %v864_v1 }
 0x15f   :  { %v659_v7 = vadd.f32 %v2476_v44, %v658_v5  ;;  %v2133_v8 = vpop.f32.mrb[62].mxu0 }
 0x160   :  { %v806_v9 = vmul.f32 %v2481_v46, %v667_v4  ;;  %v670_v10 = vadd.f32 %v2133_v8, %v2476_v44  ;;  %v661_v11 = vpop.f32.mrb[63].mxu0  ;;  %2206 = vmatprep.mubr.bf16.mxu1 %v900_v6  ;;  %vm735_vm13 = vcmp.ge.f32.partialorder %v667_v4, 0.0 }
 0x161   :  { %v804_v12 = vmul.f32 %v2481_v46, %v659_v7  ;;  %v662_v13 = vadd.f32 %v2476_v44, %v661_v11  ;;  %2207 = vmatmul.mubr.bf16.gmra.mrb[52].mxu1 %v901_v3  ;;  %vm733_vm14 = vcmp.ge.f32.partialorder %v659_v7, 0.0  ;;  %v2614_v44 = vld [vmem:[%s2781_s5] ss:$0 sm:$0xff] }
 0x162   :  { %vm736_vm15 = vcmp.ge.f32.partialorder %v670_v10, 0.0  ;;  %v807_v14 = vmul.f32 %v2481_v46, %v670_v10  ;;  %v870_v16 = vsel %vm735_vm13, %v667_v4, %v806_v9 }
 0x163   :  { %vm734_vm0 = vcmp.ge.f32.partialorder %v662_v13, 0.0  ;;  %v805_v15 = vmul.f32 %v2481_v46, %v662_v13  ;;  %v868_v18 = vsel %vm733_vm14, %v659_v7, %v804_v12 }
 0x164   :  { %v871_v17 = vsel %vm736_vm15, %v670_v10, %v807_v14 }
 0x165   :  { %v869_v19 = vsel %vm734_vm0, %v662_v13, %v805_v15  ;;  %v903_v20 = vpack.c.bf16 %v871_v17, %v870_v16 }
 0x166   :  { %v902_v21 = vpack.c.bf16 %v869_v19, %v868_v18 }
 0x168   :  { %2210 = vmatprep.mubr.bf16.mxu1 %v902_v21 }
 0x169   :  { %2211 = vmatmul.mubr.bf16.gmra.mrb[56].mxu1 %v903_v20 }
 0x1c4   :  { %v2152_v22 = vpop.f32.mrb[64].mxu0 }
 0x1c5   :  { %v1009_v23 = vpop.f32.mrb[65].mxu0  ;;  %v1018_v25 = vadd.f32 %v2152_v22, %v2614_v44 }
 0x1c6   :  { %v2153_v24 = vpop.f32.mrb[66].mxu0  ;;  %v1010_v27 = vadd.f32 %v2614_v44, %v1009_v23 }
 0x1c7   :  { %v1021_v46 = vadd.f32 %v2153_v24, %v2614_v44  ;;  %v1012_v26 = vpop.f32.mrb[67].mxu0 }
 0x1c8   :  { %v1013_v28 = vadd.f32 %v2614_v44, %v1012_v26 }
 0x1c9   :  { %v1803_v29 = vpack.c.bf16 %v1021_v46, %v1018_v25 }
 0x1ca   :  { %v1798_v30 = vpack.c.bf16 %v1013_v28, %v1010_v27 }
 0x1cb   :  { %1955 = vst [vmem:[%s2782_s6 + $0x8] sm:$0xff] %v1803_v29  }
 0x1cc   :  { %1799 = vst [vmem:[%s2782_s6] sm:$0xff] %v1798_v30   ;;  %v2156_v31 = vpop.f32.mrb[0].mxu1 }
 0x1cd   :  { %v1025_v32 = vpop.f32.mrb[1].mxu1  ;;  %v1034_v34 = vadd.f32 %v2156_v31, %v2614_v44 }
 0x1ce   :  { %v2157_v33 = vpop.f32.mrb[2].mxu1  ;;  %v1026_v37 = vadd.f32 %v2614_v44, %v1025_v32 }
 0x1cf   :  { %v1037_v35 = vadd.f32 %v2157_v33, %v2614_v44  ;;  %v1028_v36 = vpop.f32.mrb[3].mxu1 }
 0x1d0   :  { %v1029_v38 = vadd.f32 %v2614_v44, %v1028_v36 }
 0x1d1   :  { %v1813_v39 = vpack.c.bf16 %v1037_v35, %v1034_v34 }
 0x1d2   :  { %v1808_v40 = vpack.c.bf16 %v1029_v38, %v1026_v37 }
 0x1d3   :  { %1957 = vst [vmem:[%s2782_s6 + $0x18] sm:$0xff] %v1813_v39  }
 0x1d4   :  { %1956 = vst [vmem:[%s2782_s6 + $0x10] sm:$0xff] %v1808_v40   ;;  %v2160_v41 = vpop.f32.mrb[4].mxu1 }
 0x1d5   :  { %v1041_v42 = vpop.f32.mrb[5].mxu1  ;;  %v1050_v45 = vadd.f32 %v2160_v41, %v2614_v44 }
 0x1d6   :  { %v2161_v43 = vpop.f32.mrb[6].mxu1  ;;  %v1042_v49 = vadd.f32 %v2614_v44, %v1041_v42 }
 0x1d7   :  { %v1053_v47 = vadd.f32 %v2161_v43, %v2614_v44  ;;  %v1044_v48 = vpop.f32.mrb[7].mxu1 }
 0x1d8   :  { %v1045_v50 = vadd.f32 %v2614_v44, %v1044_v48 }
 0x1d9   :  { %v1823_v51 = vpack.c.bf16 %v1053_v47, %v1050_v45 }
 0x1da   :  { %v1818_v52 = vpack.c.bf16 %v1045_v50, %v1042_v49 }
 0x1db   :  { %1959 = vst [vmem:[%s2782_s6 + $0x28] sm:$0xff] %v1823_v51  }
 0x1dc   :  { %1958 = vst [vmem:[%s2782_s6 + $0x20] sm:$0xff] %v1818_v52   ;;  %v2164_v53 = vpop.f32.mrb[8].mxu1 }
 0x1dd   :  { %v1057_v54 = vpop.f32.mrb[9].mxu1  ;;  %v1066_v56 = vadd.f32 %v2164_v53, %v2614_v44 }
 0x1de   :  { %v2165_v55 = vpop.f32.mrb[10].mxu1  ;;  %v1058_v59 = vadd.f32 %v2614_v44, %v1057_v54 }
 0x1df   :  { %v1069_v57 = vadd.f32 %v2165_v55, %v2614_v44  ;;  %v1060_v58 = vpop.f32.mrb[11].mxu1 }
 0x1e0   :  { %v1061_v60 = vadd.f32 %v2614_v44, %v1060_v58 }
 0x1e1   :  { %v1833_v61 = vpack.c.bf16 %v1069_v57, %v1066_v56 }
 0x1e2   :  { %v1828_v62 = vpack.c.bf16 %v1061_v60, %v1058_v59 }
 0x1e3   :  { %1961 = vst [vmem:[%s2782_s6 + $0x38] sm:$0xff] %v1833_v61  }
 0x1e4   :  { %1960 = vst [vmem:[%s2782_s6 + $0x30] sm:$0xff] %v1828_v62   ;;  %v2168_v63 = vpop.f32.mrb[12].mxu1 }
 0x1e5   :  { %v1073_v0 = vpop.f32.mrb[13].mxu1  ;;  %v1082_v2 = vadd.f32 %v2168_v63, %v2614_v44 }
 0x1e6   :  { %v2169_v1 = vpop.f32.mrb[14].mxu1  ;;  %v1074_v5 = vadd.f32 %v2614_v44, %v1073_v0 }
 0x1e7   :  { %v1085_v3 = vadd.f32 %v2169_v1, %v2614_v44  ;;  %v1076_v4 = vpop.f32.mrb[15].mxu1 }
 0x1e8   :  { %v1077_v6 = vadd.f32 %v2614_v44, %v1076_v4 }
 0x1e9   :  { %v1843_v7 = vpack.c.bf16 %v1085_v3, %v1082_v2 }
 0x1ea   :  { %v1838_v8 = vpack.c.bf16 %v1077_v6, %v1074_v5 }
 0x1eb   :  { %1963 = vst [vmem:[%s2782_s6 + $0x48] sm:$0xff] %v1843_v7  }
 0x1ec   :  { %1962 = vst [vmem:[%s2782_s6 + $0x40] sm:$0xff] %v1838_v8   ;;  %v2172_v9 = vpop.f32.mrb[16].mxu1 }
 0x1ed   :  { %v1089_v10 = vpop.f32.mrb[17].mxu1  ;;  %v1098_v12 = vadd.f32 %v2172_v9, %v2614_v44 }
 0x1ee   :  { %v2173_v11 = vpop.f32.mrb[18].mxu1  ;;  %v1090_v15 = vadd.f32 %v2614_v44, %v1089_v10 }
 0x1ef   :  { %v1101_v13 = vadd.f32 %v2173_v11, %v2614_v44  ;;  %v1092_v14 = vpop.f32.mrb[19].mxu1 }
 0x1f0   :  { %v1093_v16 = vadd.f32 %v2614_v44, %v1092_v14 }
 0x1f1   :  { %v1853_v17 = vpack.c.bf16 %v1101_v13, %v1098_v12 }
 0x1f2   :  { %v1848_v18 = vpack.c.bf16 %v1093_v16, %v1090_v15 }
 0x1f3   :  { %1965 = vst [vmem:[%s2782_s6 + $0x58] sm:$0xff] %v1853_v17  }
 0x1f4   :  { %1964 = vst [vmem:[%s2782_s6 + $0x50] sm:$0xff] %v1848_v18   ;;  %v2176_v19 = vpop.f32.mrb[20].mxu1 }
 0x1f5   :  { %v1105_v20 = vpop.f32.mrb[21].mxu1  ;;  %v1114_v22 = vadd.f32 %v2176_v19, %v2614_v44 }
 0x1f6   :  { %v2177_v21 = vpop.f32.mrb[22].mxu1  ;;  %v1106_v25 = vadd.f32 %v2614_v44, %v1105_v20 }
 0x1f7   :  { %v1117_v23 = vadd.f32 %v2177_v21, %v2614_v44  ;;  %v1108_v24 = vpop.f32.mrb[23].mxu1 }
 0x1f8   :  { %v1109_v46 = vadd.f32 %v2614_v44, %v1108_v24 }
 0x1f9   :  { %v1863_v26 = vpack.c.bf16 %v1117_v23, %v1114_v22 }
 0x1fa   :  { %v1858_v27 = vpack.c.bf16 %v1109_v46, %v1106_v25 }
 0x1fb   :  { %1967 = vst [vmem:[%s2782_s6 + $0x68] sm:$0xff] %v1863_v26  }
 0x1fc   :  { %1966 = vst [vmem:[%s2782_s6 + $0x60] sm:$0xff] %v1858_v27   ;;  %v2180_v28 = vpop.f32.mrb[24].mxu1 }
 0x1fd   :  { %v1121_v29 = vpop.f32.mrb[25].mxu1  ;;  %v1130_v31 = vadd.f32 %v2180_v28, %v2614_v44 }
 0x1fe   :  { %v2181_v30 = vpop.f32.mrb[26].mxu1  ;;  %v1122_v34 = vadd.f32 %v2614_v44, %v1121_v29 }
 0x1ff   :  { %v1133_v32 = vadd.f32 %v2181_v30, %v2614_v44  ;;  %v1124_v33 = vpop.f32.mrb[27].mxu1 }
 0x200   :  { %v1125_v35 = vadd.f32 %v2614_v44, %v1124_v33 }
 0x201   :  { %v1873_v36 = vpack.c.bf16 %v1133_v32, %v1130_v31 }
 0x202   :  { %v1868_v37 = vpack.c.bf16 %v1125_v35, %v1122_v34 }
 0x203   :  { %1969 = vst [vmem:[%s2782_s6 + $0x78] sm:$0xff] %v1873_v36  }
 0x204   :  { %1968 = vst [vmem:[%s2782_s6 + $0x70] sm:$0xff] %v1868_v37   ;;  %v2184_v38 = vpop.f32.mrb[28].mxu1 }
 0x205   :  { %v1137_v39 = vpop.f32.mrb[29].mxu1  ;;  %v1146_v41 = vadd.f32 %v2184_v38, %v2614_v44 }
 0x206   :  { %v2185_v40 = vpop.f32.mrb[30].mxu1  ;;  %v1138_v45 = vadd.f32 %v2614_v44, %v1137_v39 }
 0x207   :  { %v1149_v42 = vadd.f32 %v2185_v40, %v2614_v44  ;;  %v1140_v43 = vpop.f32.mrb[31].mxu1 }
 0x208   :  { %v1141_v47 = vadd.f32 %v2614_v44, %v1140_v43 }
 0x209   :  { %v1883_v48 = vpack.c.bf16 %v1149_v42, %v1146_v41 }
 0x20a   :  { %v1878_v49 = vpack.c.bf16 %v1141_v47, %v1138_v45 }
 0x20b   :  { %1971 = vst [vmem:[%s2782_s6 + $0x88] sm:$0xff] %v1883_v48  }
 0x20c   :  { %1970 = vst [vmem:[%s2782_s6 + $0x80] sm:$0xff] %v1878_v49   ;;  %v2188_v50 = vpop.f32.mrb[32].mxu1 }
 0x20d   :  { %v1153_v51 = vpop.f32.mrb[33].mxu1  ;;  %v1162_v53 = vadd.f32 %v2188_v50, %v2614_v44 }
 0x20e   :  { %v2189_v52 = vpop.f32.mrb[34].mxu1  ;;  %v1154_v56 = vadd.f32 %v2614_v44, %v1153_v51 }
 0x20f   :  { %v1165_v54 = vadd.f32 %v2189_v52, %v2614_v44  ;;  %v1156_v55 = vpop.f32.mrb[35].mxu1 }
 0x210   :  { %v1157_v57 = vadd.f32 %v2614_v44, %v1156_v55 }
 0x211   :  { %v1893_v58 = vpack.c.bf16 %v1165_v54, %v1162_v53 }
 0x212   :  { %v1888_v59 = vpack.c.bf16 %v1157_v57, %v1154_v56 }
 0x213   :  { %1973 = vst [vmem:[%s2782_s6 + $0x98] sm:$0xff] %v1893_v58  }
 0x214   :  { %1972 = vst [vmem:[%s2782_s6 + $0x90] sm:$0xff] %v1888_v59   ;;  %v2192_v60 = vpop.f32.mrb[36].mxu1 }
 0x215   :  { %v1169_v61 = vpop.f32.mrb[37].mxu1  ;;  %v1178_v63 = vadd.f32 %v2192_v60, %v2614_v44 }
 0x216   :  { %v2193_v62 = vpop.f32.mrb[38].mxu1  ;;  %v1170_v2 = vadd.f32 %v2614_v44, %v1169_v61 }
 0x217   :  { %v1181_v0 = vadd.f32 %v2193_v62, %v2614_v44  ;;  %v1172_v1 = vpop.f32.mrb[39].mxu1 }
 0x218   :  { %v1173_v3 = vadd.f32 %v2614_v44, %v1172_v1 }
 0x219   :  { %v1903_v4 = vpack.c.bf16 %v1181_v0, %v1178_v63 }
 0x21a   :  { %v1898_v5 = vpack.c.bf16 %v1173_v3, %v1170_v2 }
 0x21b   :  { %1975 = vst [vmem:[%s2782_s6 + $0xa8] sm:$0xff] %v1903_v4  }
 0x21c   :  { %1974 = vst [vmem:[%s2782_s6 + $0xa0] sm:$0xff] %v1898_v5   ;;  %v2196_v6 = vpop.f32.mrb[40].mxu1 }
 0x21d   :  { %v1185_v7 = vpop.f32.mrb[41].mxu1  ;;  %v1194_v9 = vadd.f32 %v2196_v6, %v2614_v44 }
 0x21e   :  { %v2197_v8 = vpop.f32.mrb[42].mxu1  ;;  %v1186_v12 = vadd.f32 %v2614_v44, %v1185_v7 }
 0x21f   :  { %v1197_v10 = vadd.f32 %v2197_v8, %v2614_v44  ;;  %v1188_v11 = vpop.f32.mrb[43].mxu1 }
 0x220   :  { %v1189_v13 = vadd.f32 %v2614_v44, %v1188_v11 }
 0x221   :  { %v1913_v14 = vpack.c.bf16 %v1197_v10, %v1194_v9 }
 0x222   :  { %v1908_v15 = vpack.c.bf16 %v1189_v13, %v1186_v12 }
 0x223   :  { %1977 = vst [vmem:[%s2782_s6 + $0xb8] sm:$0xff] %v1913_v14  }
 0x224   :  { %1976 = vst [vmem:[%s2782_s6 + $0xb0] sm:$0xff] %v1908_v15   ;;  %v2200_v16 = vpop.f32.mrb[44].mxu1 }
 0x225   :  { %v1201_v17 = vpop.f32.mrb[45].mxu1  ;;  %v1210_v19 = vadd.f32 %v2200_v16, %v2614_v44 }
 0x226   :  { %v2201_v18 = vpop.f32.mrb[46].mxu1  ;;  %v1202_v22 = vadd.f32 %v2614_v44, %v1201_v17 }
 0x227   :  { %v1213_v20 = vadd.f32 %v2201_v18, %v2614_v44  ;;  %v1204_v21 = vpop.f32.mrb[47].mxu1 }
 0x228   :  { %v1205_v23 = vadd.f32 %v2614_v44, %v1204_v21 }
 0x229   :  { %v1923_v24 = vpack.c.bf16 %v1213_v20, %v1210_v19 }
 0x22a   :  { %v1918_v25 = vpack.c.bf16 %v1205_v23, %v1202_v22 }
 0x22b   :  { %1979 = vst [vmem:[%s2782_s6 + $0xc8] sm:$0xff] %v1923_v24  }
 0x22c   :  { %1978 = vst [vmem:[%s2782_s6 + $0xc0] sm:$0xff] %v1918_v25   ;;  %v2204_v46 = vpop.f32.mrb[48].mxu1 }
 0x22d   :  { %v1217_v26 = vpop.f32.mrb[49].mxu1  ;;  %v1226_v28 = vadd.f32 %v2204_v46, %v2614_v44 }
 0x22e   :  { %v2205_v27 = vpop.f32.mrb[50].mxu1  ;;  %v1218_v31 = vadd.f32 %v2614_v44, %v1217_v26 }
 0x22f   :  { %v1229_v29 = vadd.f32 %v2205_v27, %v2614_v44  ;;  %v1220_v30 = vpop.f32.mrb[51].mxu1 }
 0x230   :  { %v1221_v32 = vadd.f32 %v2614_v44, %v1220_v30 }
 0x231   :  { %v1933_v33 = vpack.c.bf16 %v1229_v29, %v1226_v28 }
 0x232   :  { %v1928_v34 = vpack.c.bf16 %v1221_v32, %v1218_v31 }
 0x233   :  { %1981 = vst [vmem:[%s2782_s6 + $0xd8] sm:$0xff] %v1933_v33  }
 0x234   :  { %1980 = vst [vmem:[%s2782_s6 + $0xd0] sm:$0xff] %v1928_v34   ;;  %v2208_v35 = vpop.f32.mrb[52].mxu1 }
 0x235   :  { %v1233_v36 = vpop.f32.mrb[53].mxu1  ;;  %v1242_v38 = vadd.f32 %v2208_v35, %v2614_v44 }
 0x236   :  { %v2209_v37 = vpop.f32.mrb[54].mxu1  ;;  %v1234_v41 = vadd.f32 %v2614_v44, %v1233_v36 }
 0x237   :  { %v1245_v39 = vadd.f32 %v2209_v37, %v2614_v44  ;;  %v1236_v40 = vpop.f32.mrb[55].mxu1 }
 0x238   :  { %v1237_v42 = vadd.f32 %v2614_v44, %v1236_v40 }
 0x239   :  { %v1943_v43 = vpack.c.bf16 %v1245_v39, %v1242_v38 }
 0x23a   :  { %v1938_v45 = vpack.c.bf16 %v1237_v42, %v1234_v41 }
 0x23b   :  { %1983 = vst [vmem:[%s2782_s6 + $0xe8] sm:$0xff] %v1943_v43  }
 0x23c   :  { %1982 = vst [vmem:[%s2782_s6 + $0xe0] sm:$0xff] %v1938_v45   ;;  %v2212_v47 = vpop.f32.mrb[56].mxu1 }
 0x23d   :  { %v1249_v48 = vpop.f32.mrb[57].mxu1  ;;  %v1258_v50 = vadd.f32 %v2212_v47, %v2614_v44 }
 0x23e   :  { %v2213_v49 = vpop.f32.mrb[58].mxu1  ;;  %v1250_v53 = vadd.f32 %v2614_v44, %v1249_v48 }
 0x23f   :  { %v1261_v51 = vadd.f32 %v2213_v49, %v2614_v44  ;;  %v1252_v52 = vpop.f32.mrb[59].mxu1 }
 0x240   :  { %v1253_v54 = vadd.f32 %v2614_v44, %v1252_v52 }
 0x241   :  { %v1953_v55 = vpack.c.bf16 %v1261_v51, %v1258_v50 }
 0x242   :  { %v1948_v56 = vpack.c.bf16 %v1253_v54, %v1250_v53 }
 0x243   :  { %1985 = vst [vmem:[%s2782_s6 + $0xf8] sm:$0xff] %v1953_v55  }
 0x244   :  { %1984 = vst [vmem:[%s2782_s6 + $0xf0] sm:$0xff] %v1948_v56  }

</bundles_post_ra>
